<compile_context>
chip_gen: v6e
topology: v6e:2x2x1
jax: 0.10.0
libtpu: 0.0.40
codegen_flags: <defaults>
</compile_context>

<pallas_src>
import jax
import jax.numpy as jnp
from jax.experimental import pallas as pl
from jax.experimental.pallas import tpu as pltpu


# ----------------------------------------------------------------------------
# helpers
# ----------------------------------------------------------------------------
def _round_up(x, m):
    return ((x + m - 1) // m) * m


def _pad2(x, rows, cols):
    """Zero-pad a 2-D array up to (rows, cols); no-op if already that shape."""
    r, c = x.shape
    if r == rows and c == cols:
        return x
    return jnp.pad(x, ((0, rows - r), (0, cols - c)))


_TPU_INFO_CACHE = None


def _tpu_info():
    """(vmem_cap_bytes, num_tensorcores) with conservative fallbacks."""
    global _TPU_INFO_CACHE
    if _TPU_INFO_CACHE is not None:
        return _TPU_INFO_CACHE

    kind = ""
    try:
        kind = (getattr(jax.devices()[0], "device_kind", "") or "").lower()
    except Exception:
        kind = ""
    is_v7 = ("v7" in kind) or ("7x" in kind)

    vmem_phys = None
    try:
        vmem_phys = int(pltpu.get_tpu_info().vmem_capacity_bytes)
    except Exception:
        vmem_phys = None
    if vmem_phys is None or vmem_phys <= 0:
        vmem_phys = (64 << 20) if is_v7 else (128 << 20)

    # leave ~25% headroom for compiler-internal scratch; hard cap at 100 MiB
    cap = int(min(vmem_phys * 3 // 4, 100 << 20))
    cores = 2 if is_v7 else 1
    _TPU_INFO_CACHE = (cap, cores)
    return _TPU_INFO_CACHE


# ----------------------------------------------------------------------------
# kernels
# ----------------------------------------------------------------------------
def _single_block_kernel(y_ref, a_ref, o_ref):
    """Whole problem resident in VMEM: one MXU matmul, no grid."""
    o_ref[...] = jnp.dot(
        y_ref[...], a_ref[...], preferred_element_type=jnp.float32
    ).astype(o_ref.dtype)


def _make_tiled_kernel(tk, y_resident, use_scratch):
    """Tiled x_hat = y @ A with the reduction (M) axis last in the grid.

    tk          : reduction tile size (static)
    y_resident  : y block is the full (Bp, Mp) operand, slice it in-kernel
    use_scratch : accumulate in an f32 scratch (only needed for non-f32 out)
    """

    def body(y_ref, a_ref, o_ref, acc_ref):
        k = pl.program_id(1)
        acc = acc_ref if use_scratch else o_ref

        @pl.when(k == 0)
        def _init():
            acc[...] = jnp.zeros_like(acc)

        if y_resident:
            start = pl.multiple_of(k * tk, tk)
            y_tile = y_ref[:, pl.ds(start, tk)]
        else:
            y_tile = y_ref[...]

        acc[...] += jnp.dot(
            y_tile, a_ref[...], preferred_element_type=jnp.float32
        )

        if use_scratch:
            @pl.when(k == pl.num_programs(1) - 1)
            def _fin():
                o_ref[...] = acc_ref[...].astype(o_ref.dtype)

    if use_scratch:
        return body
    return lambda y_ref, a_ref, o_ref: body(y_ref, a_ref, o_ref, None)


# ----------------------------------------------------------------------------
# operator preparation (hoisted out of the per-call path, cacheable)
# ----------------------------------------------------------------------------
_FAST_PATH_BYTES = 2 << 20        # genuinely tiny problems only


def prepare_physics(A, *, tn=1024, tk=2048, physics_dtype=None):
    """Cast + zero-pad A once and pick a static tiling plan.

    Returns a dict holding the padded operator (device array) and all static
    plan metadata so every forward call only pads the (tiny) y operand.
    """
    vmem_cap, cores = _tpu_info()
    M, N = A.shape

    if physics_dtype is not None:
        A = A.astype(physics_dtype)
    a_item = jnp.dtype(A.dtype).itemsize

    Mp128 = _round_up(M, 128)
    Np128 = _round_up(N, 128)

    # -------------------------------------------------------------- fast path
    approx_total = Mp128 * Np128 * a_item + 8 * (Mp128 + Np128) * 4
    if approx_total <= _FAST_PATH_BYTES:
        Ap = _pad2(A, Mp128, Np128)
        return dict(mode="fast", Ap=Ap, M=M, N=N, Mp=Mp128, Np=Np128,
                    vmem_cap=vmem_cap)

    # ------------------------------------------------------------- tiled plan
    # Balanced, 128-aligned tiles that (a) never exceed the requested tk/tn,
    # (b) minimize zero-padding, (c) give >=2 N-tiles only when 2 TCs exist.
    n_k = max(1, pl.cdiv(Mp128, tk))
    tk_eff = _round_up(pl.cdiv(Mp128, n_k), 128)

    n_j = max(pl.cdiv(Np128, tn), min(cores, Np128 // 128))
    tn_eff = _round_up(pl.cdiv(Np128, n_j), 128)

    # Safeguard: keep double-buffered A well inside the per-generation VMEM
    # cap (never triggers at the 2048x1024 defaults).
    for _ in range(8):
        if 2 * tk_eff * tn_eff * a_item <= max(vmem_cap - (16 << 20), 8 << 20):
            break
        n_k += 1
        new_tk = _round_up(pl.cdiv(Mp128, n_k), 128)
        if new_tk >= tk_eff and tk_eff <= 128:
            break
        tk_eff = min(tk_eff, new_tk) if new_tk >= tk_eff else new_tk

    Mp = n_k * tk_eff
    Np = n_j * tn_eff
    Ap = _pad2(A, Mp, Np)

    return dict(mode="tiled", Ap=Ap, M=M, N=N, Mp=Mp, Np=Np,
                tk=tk_eff, tn=tn_eff, grid=(n_j, n_k), vmem_cap=vmem_cap)


# ----------------------------------------------------------------------------
# per-call execution
# ----------------------------------------------------------------------------
def _run_prepared(y, prep, img_shape):
    B, M = y.shape
    C, H, W = img_shape
    N = prep["N"]
    assert M == prep["M"]
    assert C * H * W == N

    out_dtype = y.dtype
    Ap = prep["Ap"]
    vmem_cap = prep["vmem_cap"]

    # bf16-stored operator: feed the MXU a true bf16 x bf16 matmul (f32 acc)
    # instead of letting jnp.dot promote every A tile back to f32.
    if Ap.dtype == jnp.bfloat16 and y.dtype != jnp.bfloat16:
        y = y.astype(jnp.bfloat16)
    y_item = jnp.dtype(y.dtype).itemsize
    out_item = jnp.dtype(out_dtype).itemsize

    Bp = max(8, _round_up(B, 8))

    # ------------------------------------------------------------------ fast
    if prep["mode"] == "fast":
        Mp, Np = prep["Mp"], prep["Np"]
        yp = _pad2(y, Bp, Mp)
        fast_bytes = (Mp * Np * Ap.dtype.itemsize
                      + Bp * Mp * y_item + Bp * Np * out_item)
        vmem_limit = int(min(max(4 * fast_bytes, 32 << 20), vmem_cap))
        x_flat = pl.pallas_call(
            _single_block_kernel,
            out_shape=jax.ShapeDtypeStruct((Bp, Np), out_dtype),
            compiler_params=pltpu.CompilerParams(vmem_limit_bytes=vmem_limit),
        )(yp, Ap)
        return x_flat[:B, :N].reshape(B, C, H, W)

    # ----------------------------------------------------------------- tiled
    Mp, Np = prep["Mp"], prep["Np"]
    tk, tn = prep["tk"], prep["tn"]
    grid = prep["grid"]

    yp = _pad2(y, Bp, Mp)

    # keep the tiny y operand fully resident in VMEM unless it is too large
    y_resident = (2 * Bp * Mp * y_item) <= (8 << 20)
    use_scratch = jnp.dtype(out_dtype) != jnp.dtype(jnp.float32)

    if y_resident:
        y_spec = pl.BlockSpec((Bp, Mp), lambda j, k: (0, 0))
    else:
        y_spec = pl.BlockSpec((Bp, tk), lambda j, k: (0, k))
    a_spec = pl.BlockSpec((tk, tn), lambda j, k: (k, j))
    out_spec = pl.BlockSpec((Bp, tn), lambda j, k: (0, j))
    scratch = [pltpu.VMEM((Bp, tn), jnp.float32)] if use_scratch else []

    # VMEM budget: double-buffered A + y + out (+ scratch) + margin
    need = (
        2 * tk * tn * Ap.dtype.itemsize
        + 2 * Bp * (Mp if y_resident else tk) * y_item
        + 2 * Bp * tn * out_item
        + (Bp * tn * 4 if use_scratch else 0)
        + (4 << 20)
    )
    vmem_limit = int(min(max(need, 32 << 20), vmem_cap))

    kernel = _make_tiled_kernel(tk, y_resident, use_scratch)

    x_flat = pl.pallas_call(
        kernel,
        out_shape=jax.ShapeDtypeStruct((Bp, Np), out_dtype),
        grid_spec=pltpu.PrefetchScalarGridSpec(
            num_scalar_prefetch=0,
            grid=grid,                       # (N tiles, M tiles) — reduction last
            in_specs=[y_spec, a_spec],
            out_specs=out_spec,
            scratch_shapes=scratch,
        ),
        compiler_params=pltpu.CompilerParams(
            dimension_semantics=("parallel", "arbitrary"),
            vmem_limit_bytes=vmem_limit,
        ),
    )(yp, Ap)

    return x_flat[:B, :N].reshape(B, C, H, W)


def adjoint_reconstruct(y, A, img_shape, *, tn=1024, tk=2048, physics_dtype=None):
    """One-shot x_hat = A^T y (prepares the operator inline; prefer the class
    wrapper below which caches the prepared operator across calls)."""
    prep = prepare_physics(A, tn=tn, tk=tk, physics_dtype=physics_dtype)
    return _run_prepared(y, prep, img_shape)


# ----------------------------------------------------------------------------
# module wrapper
# ----------------------------------------------------------------------------
class Reconstructor:
    """JAX/Pallas analogue of deepinv.models.Reconstructor (base class).

    forward(y, physics) -> x_hat, with physics given as a dense matrix A.
    The padded / dtype-cast operator is prepared once and cached, so repeated
    forward calls only stream A through HBM a single time each.
    """

    def __init__(self, img_shape, physics_dtype=None, tn=1024, tk=2048):
        self.img_shape = tuple(img_shape)       # (C, H, W)
        self.physics_dtype = physics_dtype      # e.g. jnp.bfloat16 for static A
        self.tn = tn
        self.tk = tk
        self._prepared = {}

    def _prepare(self, A):
        key = (id(A), tuple(A.shape), str(A.dtype))
        prep = self._prepared.get(key)
        if prep is None:
            prep = prepare_physics(A, tn=self.tn, tk=self.tk,
                                   physics_dtype=self.physics_dtype)
            self._prepared[key] = prep
        return prep

    def forward(self, y, physics, **kwargs):
        # physics: dense forward operator A of shape (M, N)
        return _run_prepared(y, self._prepare(physics), self.img_shape)

    __call__ = forward


# ----------------------------------------------------------------------------
# demo / self-test
# ----------------------------------------------------------------------------
if __name__ == "__main__":
    key = jax.random.PRNGKey(0)
    k_a0, k_x0, k_a, k_x, k_a2, k_x2 = jax.random.split(key, 6)

    # ---- test 0: tiny operator (single-block VMEM fast path) ---------------
    B0, C0, H0, W0 = 2, 1, 8, 16
    N0 = C0 * H0 * W0      # 128
    M0 = 128
    A0 = jax.random.normal(k_a0, (M0, N0), dtype=jnp.float32) / jnp.sqrt(M0)
    x0 = jax.random.normal(k_x0, (B0, C0, H0, W0), dtype=jnp.float32)
    y0 = x0.reshape(B0, N0) @ A0.T
    model0 = Reconstructor(img_shape=(C0, H0, W0))
    x_hat0 = jax.block_until_ready(model0(y0, A0))
    ref0 = (y0 @ A0).reshape(B0, C0, H0, W0)
    assert x_hat0.shape == (B0, C0, H0, W0)
    assert jnp.allclose(x_hat0, ref0, atol=1e-3, rtol=1e-3)

    # ---- test 1: small demo (tiled path, single/few grid steps) ------------
    B, C, H, W = 2, 4, 16, 16
    N = C * H * W          # 1024
    M = 512
    A = jax.random.normal(k_a, (M, N), dtype=jnp.float32) / jnp.sqrt(M)
    x_true = jax.random.normal(k_x, (B, C, H, W), dtype=jnp.float32)
    y = x_true.reshape(B, N) @ A.T
    model = Reconstructor(img_shape=(C, H, W))
    x_hat = jax.block_until_ready(model(y, A))
    ref = (y @ A).reshape(B, C, H, W)
    assert x_hat.shape == (B, C, H, W)
    assert jnp.allclose(x_hat, ref, atol=1e-3, rtol=1e-3)

    # ---- test 2: larger operator (tiled MXU path, resident y) --------------
    B2, C2, H2, W2 = 2, 4, 32, 32
    N2 = C2 * H2 * W2      # 4096
    M2 = 1024
    A2 = jax.random.normal(k_a2, (M2, N2), dtype=jnp.float32) / jnp.sqrt(M2)
    x2 = jax.random.normal(k_x2, (B2, C2, H2, W2), dtype=jnp.float32)
    y2 = x2.reshape(B2, N2) @ A2.T
    model2 = Reconstructor(img_shape=(C2, H2, W2))
    x_hat2 = jax.block_until_ready(model2(y2, A2))
    ref2 = (y2 @ A2).reshape(B2, C2, H2, W2)
    assert x_hat2.shape == (B2, C2, H2, W2)
    assert jnp.allclose(x_hat2, ref2, atol=1e-3, rtol=1e-3)

    # second call reuses the cached padded operator (no extra A round-trip)
    x_hat2b = jax.block_until_ready(model2(y2, A2))
    assert jnp.allclose(x_hat2b, ref2, atol=1e-3, rtol=1e-3)

    # ---- test 3: bf16-stored operator (halves A HBM traffic) ---------------
    model_bf16 = Reconstructor(img_shape=(C2, H2, W2), physics_dtype=jnp.bfloat16)
    x_hat3 = jax.block_until_ready(model_bf16(y2, A2))
    assert x_hat3.shape == (B2, C2, H2, W2)
    assert jnp.allclose(x_hat3, ref2, atol=5e-2, rtol=5e-2)

    print("KERNEL_OK")
</pallas_src>

<mosaic_0001>
module attributes {stable_mosaic.version = 11 : i64} {
  func.func @_single_block_kernel(%arg0: memref<8x128xf32, #tpu.memory_space<vmem>>, %arg1: memref<128x128xf32, #tpu.memory_space<vmem>>, %arg2: memref<8x128xf32, #tpu.memory_space<vmem>>) attributes {dimension_semantics = [], scalar_prefetch = 0 : i64, scratch_operands = 0 : i64, tpu.core_type = #tpu.core_type<tc>} {
    %c0 = arith.constant 0 : index
    %c0_0 = arith.constant 0 : index
    %0 = vector.load %arg0[%c0, %c0_0] : memref<8x128xf32, #tpu.memory_space<vmem>>, vector<8x128xf32>
    %c0_1 = arith.constant 0 : index
    %c0_2 = arith.constant 0 : index
    %1 = vector.load %arg1[%c0_1, %c0_2] : memref<128x128xf32, #tpu.memory_space<vmem>>, vector<128x128xf32>
    %cst = arith.constant dense<0.000000e+00> : vector<8x128xf32>
    %2 = tpu.matmul %0, %1, %cst {dimension_numbers = #tpu.dot_dimension_numbers<[1], [0], [0], [1], [0, 0, 1, 1], [], []>} : vector<8x128xf32>, vector<128x128xf32>, vector<8x128xf32> -> vector<8x128xf32>
    %c0_3 = arith.constant 0 : index
    %c0_4 = arith.constant 0 : index
    %3 = vector.load %arg2[%c0_3, %c0_4] : memref<8x128xf32, #tpu.memory_space<vmem>>, vector<8x128xf32>
    tpu.vector_store %arg2[%c0_3, %c0_4], %2 {strides = array<i32>} : memref<8x128xf32, #tpu.memory_space<vmem>>, vector<8x128xf32>,
    return
  }
}

</mosaic_0001>

<bundles_post_ra>
// kernel: tpu_custom_call.1
= control target key start
LH: loop header
LB: loop body
LE: loop exit
PB: predicated region body
PF: predicated region fallthrough
CT: control target
= control target key end

     0   :  { %7 = vsyncpa [#allocation3], 0  ;;  %s298_s0 = inlined_call_operand.hbm [shape: f32[8,128], index: 0, kind: input, shape index: {}]   ;;  %s299_s1 = inlined_call_operand.hbm [shape: f32[128,128], index: 1, kind: input, shape index: {}]   ;;  %s300_s2 = inlined_call_operand.hbm [shape: f32[8,128], index: 2, kind: output, shape index: {}]  }
   0x1   :  { %8 = vsyncpa [#allocation6], 0 }
   0x2   :  { %9 = vsyncpa [#allocation4], 0  ;;  %s267_s9 = smov [#allocation2]   ;;  %s268_s11 = smov [#allocation5]  }
   0x3   :  { %s16_s10 = sshll.u32 %s267_s9, 4  ;;  %s25_s12 = sshll.u32 %s268_s11, 4  ;;  %s17_s10 = int_to_ptr.vmem [resolvable:$true] %s16_s10  ;;  %s26_s12 = int_to_ptr.vmem [resolvable:$true] %s25_s12 }
   0x4   :  { %s209_s13 = scalar_lea.vmem %s17_s10, 128  ;;  %p214_p1 = scmp.lt.s32.totalorder %s17_s10, %s17_s10 }
   0x5   :  { %p210_p0 = scmp.ne.s32.totalorder %s17_s10, %s209_s13  ;;  %p215_p2 = scmp.lt.s32.totalorder %s209_s13, %s209_s13 }
   0x7   :  { %p216_p3 = por %p215_p2, %p214_p1 }
   0x9   :  { %p217_p4 = pnand %p216_p3, %p210_p0 }
   0xb   :  { %220 = shalt.err (!%p217_p4)
}
   0xc   :  { %19 = dma.hbm_to_vmem [thread:$0]  %s298_s0, 128, %s17_s10, [#allocation3]  }
   0xd   :  { %s229_s16 = scalar_lea.vmem %s26_s12, 2048  ;;  %p234_p6 = scmp.lt.s32.totalorder %s26_s12, %s26_s12 }
   0xe   :  { %p230_p5 = scmp.ne.s32.totalorder %s26_s12, %s229_s16  ;;  %p235_p7 = scmp.lt.s32.totalorder %s229_s16, %s229_s16 }
  0x10   :  { %p236_p8 = por %p235_p7, %p234_p6 }
  0x12   :  { %p237_p9 = pnand %p236_p8, %p230_p5 }
  0x14   :  { %240 = shalt.err (!%p237_p9)
}
  0x15   :  { %s269_s17 = smov 128   ;;  %s270_s18 = smov 8  }
  0x16   :  { %31 = dma.hbm_to_vmem [thread:$0]  %s299_s1, 2048, %s26_s12, [#allocation6], %s269_s17, %s269_s17, %s270_s18  }
  0x17   :  { %261 = dma.done.wait [#allocation3], 128  }
  0x18   :  { %262 = vsyncadd [#allocation3], 4294967168 }
  0x19   :  { %263 = dma.done.wait [#allocation6], 2048  }
  0x1a   :  { %264 = vsyncadd [#allocation6], 4294965248  ;;  %v271_v0 = vmov 0.0   ;;  %vm272_vm0 = vmmov 0   ;;  %v54_v1 = vld [vmem:[#allocation5 + $0x78] sm:$0xff]  ;;  %v53_v2 = vld [vmem:[#allocation5 + $0x70] sm:$0xff] }
  0x1b   :  { %159 = vmatprep.subr.mxu0 %v271_v0  ;;  %191 = vmatprep.mubr.msk.f32.mxu0 %vm272_vm0, %v271_v0  ;;  %v52_v3 = vld [vmem:[#allocation5 + $0x68] sm:$0xff]  ;;  %v51_v4 = vld [vmem:[#allocation5 + $0x60] sm:$0xff]  ;;  %v50_v5 = vld [vmem:[#allocation5 + $0x58] sm:$0xff]  ;;  %s273_s0 = smov [#allocation7]  }
  0x1c   :  { %160 = vmatpush3.msra.mxu0 %v54_v1  ;;  %v49_v6 = vld [vmem:[#allocation5 + $0x50] sm:$0xff]  ;;  %v48_v7 = vld [vmem:[#allocation5 + $0x48] sm:$0xff]  ;;  %v47_v8 = vld [vmem:[#allocation5 + $0x40] sm:$0xff]  ;;  %s132_s1 = sshll.u32 %s273_s0, 4  ;;  %s133_s1 = int_to_ptr.vmem [resolvable:$true] %s132_s1 }
  0x1d   :  { %161 = vmatprep.subr.mxu0 %v271_v0  ;;  %v46_v9 = vld [vmem:[#allocation5 + $0x38] sm:$0xff]  ;;  %v45_v10 = vld [vmem:[#allocation5 + $0x30] sm:$0xff]  ;;  %v44_v11 = vld [vmem:[#allocation5 + $0x28] sm:$0xff]  ;;  %s241_s21 = scalar_lea.vmem %s133_s1, 128  ;;  %p246_p11 = scmp.lt.s32.totalorder %s133_s1, %s133_s1 }
  0x1e   :  { %162 = vmatpush3.msra.mxu0 %v53_v2  ;;  %v43_v12 = vld [vmem:[#allocation5 + $0x20] sm:$0xff]  ;;  %v42_v13 = vld [vmem:[#allocation5 + $0x18] sm:$0xff]  ;;  %v41_v14 = vld [vmem:[#allocation5 + $0x10] sm:$0xff]  ;;  %p242_p10 = scmp.ne.s32.totalorder %s133_s1, %s241_s21  ;;  %p247_p12 = scmp.lt.s32.totalorder %s241_s21, %s241_s21 }
  0x1f   :  { %163 = vmatprep.subr.mxu0 %v271_v0  ;;  %v40_v15 = vld [vmem:[#allocation5 + $0x8] sm:$0xff]  ;;  %v39_v16 = vld [vmem:[#allocation5] sm:$0xff]  ;;  %v38_v17 = vld [vmem:[#allocation2] sm:$0xff] }
  0x20   :  { %164 = vmatpush3.msra.mxu0 %v52_v3  ;;  %p248_p13 = por %p247_p12, %p246_p11 }
  0x21   :  { %165 = vmatprep.subr.mxu0 %v271_v0 }
  0x22   :  { %166 = vmatpush3.msra.mxu0 %v51_v4  ;;  %p249_p0 = pnand %p248_p13, %p242_p10 }
  0x23   :  { %167 = vmatprep.subr.mxu0 %v271_v0 }
  0x24   :  { %168 = vmatpush3.msra.mxu0 %v50_v5 }
  0x25   :  { %169 = vmatprep.subr.mxu0 %v271_v0 }
  0x26   :  { %170 = vmatpush3.msra.mxu0 %v49_v6 }
  0x27   :  { %171 = vmatprep.subr.mxu0 %v271_v0 }
  0x28   :  { %172 = vmatpush3.msra.mxu0 %v48_v7 }
  0x29   :  { %173 = vmatprep.subr.mxu0 %v271_v0 }
  0x2a   :  { %174 = vmatpush3.msra.mxu0 %v47_v8 }
  0x2b   :  { %175 = vmatprep.subr.mxu0 %v271_v0 }
  0x2c   :  { %176 = vmatpush3.msra.mxu0 %v46_v9 }
  0x2d   :  { %177 = vmatprep.subr.mxu0 %v271_v0 }
  0x2e   :  { %178 = vmatpush3.msra.mxu0 %v45_v10 }
  0x2f   :  { %179 = vmatprep.subr.mxu0 %v271_v0 }
  0x30   :  { %180 = vmatpush3.msra.mxu0 %v44_v11 }
  0x31   :  { %181 = vmatprep.subr.mxu0 %v271_v0 }
  0x32   :  { %182 = vmatpush3.msra.mxu0 %v43_v12 }
  0x33   :  { %183 = vmatprep.subr.mxu0 %v271_v0 }
  0x34   :  { %184 = vmatpush3.msra.mxu0 %v42_v13 }
  0x35   :  { %185 = vmatprep.subr.mxu0 %v271_v0 }
  0x36   :  { %186 = vmatpush3.msra.mxu0 %v41_v14 }
  0x37   :  { %187 = vmatprep.subr.mxu0 %v271_v0 }
  0x38   :  { %188 = vmatpush3.msra.mxu0 %v40_v15 }
  0x39   :  { %189 = vmatprep.subr.mxu0 %v271_v0 }
  0x3a   :  { %190 = vmatpush3.msra.mxu0 %v39_v16 }
  0x3b   :  { %192 = vmatmul.mubr.f32.vlgmr.msra.gmra.mxu0 %v38_v17 }
  0xfb   :  { %v121_v18 = vpop.f32.mrf.mxu0 }
  0xfc   :  { %125 = vst [vmem:[#allocation7] sm:$0xff] %v121_v18 }
  0xfd   :  { %v193_v19 = vpop.f32.mrf.mxu0 }
  0xfe   :  { %252 = shalt.err (!%p249_p0)
}
  0xff   :  { %135 = dma.vmem_to_hbm [thread:$0]  %s133_s1, 128, %s300_s2, [#allocation4]  }
 0x100   :  { %265 = dma.done.wait [#allocation4], 128  }
 0x101   :  { %266 = vsyncadd [#allocation4], 4294967168 }
 0x102   :  { %139 = vsyncpa [#allocation3], 1 }
 0x103   :  { %140 = vsyncpa [#allocation6], 1 }
 0x104   :  { %141 = vsyncpa [#allocation4], 1 }

</bundles_post_ra>
